<compile_context>
chip_gen: v7x
topology: tpu7x:2x2x1
jax: 0.10.0
libtpu: 0.0.40
codegen_flags: <defaults>
</compile_context>

<pallas_src>
import functools

import jax
import jax.numpy as jnp
from jax import lax
from jax.experimental import pallas as pl
from jax.experimental.pallas import tpu as pltpu


def _tile_loss(score_ref, target_ref, step, *, ignore_label, hw, tile):
    """Per-(image, lane-tile) NLL losses; 0 for ignored / out-of-range lanes."""
    s = score_ref[...]                                   # (C, T) probabilities, native dtype
    t = target_ref[...]                                  # (1, T) int32 labels
    cls = lax.broadcasted_iota(jnp.int32, s.shape, 0)    # class id per sublane
    # one-hot select of p[target] BEFORE the log: `tile` EUP log ops, not C*tile
    p_t = jnp.sum(jnp.where(cls == t, s, jnp.zeros_like(s)),
                  axis=0, keepdims=True).astype(jnp.float32)     # (1, T) f32
    lane = lax.broadcasted_iota(jnp.int32, t.shape, 1)
    valid = (t != ignore_label) & ((step * tile + lane) < hw)    # ignore + ragged tail
    return jnp.where(valid, -jnp.log(p_t), 0.0)                  # (1, T) f32


def _nll_std_kernel(score_ref, target_ref, sum_ref, cnt_ref, acc_sum, acc_cnt,
                    *, ignore_label, hw, tile):
    """Accumulate per-image sum / nonzero-count across the pixel (lane) grid axis."""
    i = pl.program_id(1)

    @pl.when(i == 0)
    def _():
        acc_sum[...] = jnp.zeros_like(acc_sum)
        acc_cnt[...] = jnp.zeros_like(acc_cnt)

    loss = _tile_loss(score_ref, target_ref, i,
                      ignore_label=ignore_label, hw=hw, tile=tile)
    acc_sum[...] += loss
    acc_cnt[...] += (loss != 0.0).astype(jnp.float32)

    @pl.when(i == pl.num_programs(1) - 1)
    def _():
        sum_ref[...] = jnp.sum(acc_sum[...], axis=1, keepdims=True)
        cnt_ref[...] = jnp.sum(acc_cnt[...], axis=1, keepdims=True)


def _nll_map_kernel(score_ref, target_ref, loss_ref, *, ignore_label, hw, tile):
    """Per-pixel loss map (only needed for the 'som' top-k path)."""
    i = pl.program_id(1)
    loss_ref[...] = _tile_loss(score_ref, target_ref, i,
                               ignore_label=ignore_label, hw=hw, tile=tile)


def _pick_tile(hw, c, itemsize, max_tile, vmem_budget_bytes):
    """Largest lane tile (multiple of 128) whose double-buffered score tile fits the budget."""
    if hw % 128 != 0:
        return hw                       # full-extent lane block handles odd spatial sizes
    per_lane = 2 * c * itemsize         # double-buffered score column bytes
    budget_tile = max(128, (vmem_budget_bytes // per_lane) // 128 * 128)
    return int(min(max_tile, budget_tile, hw))


def nll_loss_pallas(score, target, *, ratio=0.2, sample="std", loss_weight=1.0,
                    ignore_label=255, max_tile=4096, vmem_budget_bytes=8 << 20):
    assert sample in ("som", "std")
    # TODO(synk): class_weight is None in the module defaults; per-class weights not wired in.
    N, C, H, W = score.shape
    HW = H * W
    P = N * HW

    score_r = score.reshape(N, C, HW)                    # free view of NCHW (no transpose)
    target_r = target.reshape(N, 1, HW).astype(jnp.int32)

    tile = _pick_tile(HW, C, score.dtype.itemsize, max_tile, vmem_budget_bytes)
    steps = pl.cdiv(HW, tile)

    in_specs = [
        pl.BlockSpec((None, C, tile), lambda n, i: (n, 0, i)),   # (C, tile) per step
        pl.BlockSpec((None, 1, tile), lambda n, i: (n, 0, i)),   # (1, tile) per step
    ]

    if sample == "std":
        kernel = functools.partial(_nll_std_kernel,
                                   ignore_label=ignore_label, hw=HW, tile=tile)
        sums, cnts = pl.pallas_call(
            kernel,
            out_shape=(
                jax.ShapeDtypeStruct((N, 1, 1), jnp.float32),    # per-image loss sum
                jax.ShapeDtypeStruct((N, 1, 1), jnp.float32),    # per-image nonzero count
            ),
            grid_spec=pltpu.PrefetchScalarGridSpec(
                num_scalar_prefetch=0,
                grid=(N, steps),
                in_specs=in_specs,
                out_specs=[
                    pl.BlockSpec((None, 1, 1), lambda n, i: (n, 0, 0)),
                    pl.BlockSpec((None, 1, 1), lambda n, i: (n, 0, 0)),
                ],
                scratch_shapes=[
                    pltpu.VMEM((1, tile), jnp.float32),
                    pltpu.VMEM((1, tile), jnp.float32),
                ],
            ),
            compiler_params=pltpu.CompilerParams(
                dimension_semantics=("parallel", "arbitrary")),
        )(score_r, target_r)
        # mean over losses != 0  ==  sum(losses) / count(losses != 0)
        mean = jnp.sum(sums) / jnp.sum(cnts)
    else:  # 'som' — hard-negative top-k done in plain JAX glue on the kernel's loss map
        kernel = functools.partial(_nll_map_kernel,
                                   ignore_label=ignore_label, hw=HW, tile=tile)
        loss_map = pl.pallas_call(
            kernel,
            out_shape=jax.ShapeDtypeStruct((N, 1, HW), jnp.float32),
            grid_spec=pltpu.PrefetchScalarGridSpec(
                num_scalar_prefetch=0,
                grid=(N, steps),
                in_specs=in_specs,
                out_specs=pl.BlockSpec((None, 1, tile), lambda n, i: (n, 0, i)),
            ),
            compiler_params=pltpu.CompilerParams(
                dimension_semantics=("parallel", "parallel")),
        )(score_r, target_r)
        losses = loss_map.reshape(-1)
        num_hns = int(ratio * P)   # TODO(synk): guard num_hns == 0 for tiny inputs (torch gives NaN too)
        top_loss = lax.top_k(losses, num_hns)[0]
        nz = top_loss != 0.0
        mean = jnp.sum(jnp.where(nz, top_loss, 0.0)) / jnp.sum(nz.astype(jnp.float32))

    return loss_weight * mean


# ----------------------------- pure-JAX references -----------------------------

def _nll_losses_ref(score, target, *, ignore_label=255):
    N, C, H, W = score.shape
    logp = jnp.log(score.astype(jnp.float32))
    t = target.astype(jnp.int32)
    safe_t = jnp.clip(t, 0, C - 1)
    picked = jnp.take_along_axis(logp, safe_t[:, None, :, :], axis=1)[:, 0]
    return jnp.where(t != ignore_label, -picked, 0.0)


def _nll_loss_std_ref(score, target, *, loss_weight=1.0, ignore_label=255):
    losses = _nll_losses_ref(score, target, ignore_label=ignore_label)
    nz = losses != 0.0
    return loss_weight * jnp.sum(jnp.where(nz, losses, 0.0)) / jnp.sum(nz)


def _nll_loss_som_ref(score, target, *, ratio, loss_weight=1.0, ignore_label=255):
    losses = _nll_losses_ref(score, target, ignore_label=ignore_label).reshape(-1)
    num_hns = int(ratio * losses.size)
    top = lax.top_k(losses, num_hns)[0]
    nz = top != 0.0
    return loss_weight * jnp.sum(jnp.where(nz, top, 0.0)) / jnp.sum(nz)


if __name__ == "__main__":
    key = jax.random.PRNGKey(0)
    k1, k2, k3, k4 = jax.random.split(key, 4)

    # Case 1: small segmentation-like shapes (HW = 256 -> single lane block).
    N, C, H, W = 2, 4, 16, 16
    logits = jax.random.normal(k1, (N, C, H, W), jnp.float32)
    score = jax.nn.softmax(logits, axis=1)               # probabilities (module takes log)
    target = jax.random.randint(k2, (N, H, W), 0, C, jnp.int32)
    target = target.at[0, 0, :4].set(255)                # some ignored pixels

    loss = nll_loss_pallas(score, target)                # default: sample='std'
    jax.block_until_ready(loss)
    ref = _nll_loss_std_ref(score, target)
    assert jnp.allclose(loss, ref, rtol=1e-5, atol=1e-6), (loss, ref)

    loss_som = nll_loss_pallas(score, target, sample="som", ratio=0.2)
    jax.block_until_ready(loss_som)
    ref_som = _nll_loss_som_ref(score, target, ratio=0.2)
    assert jnp.allclose(loss_som, ref_som, rtol=1e-5, atol=1e-6), (loss_som, ref_som)

    # Case 2: ragged last lane-block (HW = 384, tile forced to 256 -> 2 steps,
    # last block half out-of-range) to exercise the in-kernel tail masking.
    N2, C2, H2, W2 = 2, 4, 16, 24
    logits2 = jax.random.normal(k3, (N2, C2, H2, W2), jnp.float32)
    score2 = jax.nn.softmax(logits2, axis=1)
    target2 = jax.random.randint(k4, (N2, H2, W2), 0, C2, jnp.int32)
    target2 = target2.at[1, 3, :7].set(255)

    loss2 = nll_loss_pallas(score2, target2, max_tile=256)
    jax.block_until_ready(loss2)
    ref2 = _nll_loss_std_ref(score2, target2)
    assert jnp.allclose(loss2, ref2, rtol=1e-5, atol=1e-6), (loss2, ref2)

    print("KERNEL_OK")
</pallas_src>

<mosaic_0001>
module attributes {stable_mosaic.version = 11 : i64} {
  func.func @_nll_std_kernel(%arg0: i32, %arg1: i32, %arg2: memref<1x4x256xf32, #tpu.memory_space<vmem>>, %arg3: memref<1x1x256xi32, #tpu.memory_space<vmem>>, %arg4: memref<1x1x1xf32, #tpu.memory_space<vmem>>, %arg5: memref<1x1x1xf32, #tpu.memory_space<vmem>>, %arg6: memref<1x256xf32, #tpu.memory_space<vmem>>, %arg7: memref<1x256xf32, #tpu.memory_space<vmem>>) attributes {dimension_semantics = [#tpu.dimension_semantics<parallel>, #tpu.dimension_semantics<arbitrary>], iteration_bounds = array<i64: 2, 1>, scalar_prefetch = 0 : i64, scratch_operands = 2 : i64, tpu.core_type = #tpu.core_type<tc>, window_params = [{transform_indices = @transform_0, window_bounds = array<i64: 1, 4, 256>}, {transform_indices = @transform_1, window_bounds = array<i64: 1, 1, 256>}, {transform_indices = @transform_2, window_bounds = array<i64: 1, 1, 1>}, {transform_indices = @transform_3, window_bounds = array<i64: 1, 1, 1>}]} {
    %c0_i32 = arith.constant 0 : i32
    %0 = arith.cmpi eq, %arg1, %c0_i32 : i32
    %1 = arith.extui %0 : i1 to i32
    %c0_i32_0 = arith.constant 0 : i32
    %2 = arith.cmpi ne, %1, %c0_i32_0 : i32
    scf.if %2 {
      %cst_21 = arith.constant 0.000000e+00 : f32
      %41 = vector.broadcast %cst_21 : f32 to vector<1x256xf32>
      %c0_22 = arith.constant 0 : index
      %c0_23 = arith.constant 0 : index
      %42 = vector.load %arg6[%c0_22, %c0_23] : memref<1x256xf32, #tpu.memory_space<vmem>>, vector<1x256xf32>
      tpu.vector_store %arg6[%c0_22, %c0_23], %41 {strides = array<i32>} : memref<1x256xf32, #tpu.memory_space<vmem>>, vector<1x256xf32>,
      %cst_24 = arith.constant 0.000000e+00 : f32
      %43 = vector.broadcast %cst_24 : f32 to vector<1x256xf32>
      %c0_25 = arith.constant 0 : index
      %c0_26 = arith.constant 0 : index
      %44 = vector.load %arg7[%c0_25, %c0_26] : memref<1x256xf32, #tpu.memory_space<vmem>>, vector<1x256xf32>
      tpu.vector_store %arg7[%c0_25, %c0_26], %43 {strides = array<i32>} : memref<1x256xf32, #tpu.memory_space<vmem>>, vector<1x256xf32>,
    } else {
    }
    %c0 = arith.constant 0 : index
    %c0_1 = arith.constant 0 : index
    %c0_2 = arith.constant 0 : index
    %3 = vector.load %arg2[%c0, %c0_1, %c0_2] : memref<1x4x256xf32, #tpu.memory_space<vmem>>, vector<1x4x256xf32>
    %4 = vector.shape_cast %3 : vector<1x4x256xf32> to vector<4x256xf32>
    %c0_3 = arith.constant 0 : index
    %c0_4 = arith.constant 0 : index
    %c0_5 = arith.constant 0 : index
    %5 = vector.load %arg3[%c0_3, %c0_4, %c0_5] : memref<1x1x256xi32, #tpu.memory_space<vmem>>, vector<1x1x256xi32>
    %6 = vector.shape_cast %5 : vector<1x1x256xi32> to vector<1x256xi32>
    %7 = tpu.iota {dimensions = array<i32: 0>} : vector<4x256xi32>
    %8 = vector.broadcast %6 : vector<1x256xi32> to vector<4x256xi32>
    %9 = arith.cmpi eq, %7, %8 : vector<4x256xi32>
    %cst = arith.constant 0.000000e+00 : f32
    %10 = vector.broadcast %cst : f32 to vector<4x256xf32>
    %11 = arith.select %9, %4, %10 : vector<4x256xi1>, vector<4x256xf32>
    %cst_6 = arith.constant dense<0.000000e+00> : vector<256xf32>
    %12 = vector.multi_reduction <add>, %11, %cst_6 [0] : vector<4x256xf32> to vector<256xf32>
    %13 = vector.shape_cast %12 : vector<256xf32> to vector<1x256xf32>
    %14 = tpu.iota {dimensions = array<i32: 1>} : vector<1x256xi32>
    %c255_i32 = arith.constant 255 : i32
    %15 = vector.broadcast %c255_i32 : i32 to vector<1x256xi32>
    %16 = arith.cmpi ne, %6, %15 : vector<1x256xi32>
    %c256_i32 = arith.constant 256 : i32
    %17 = arith.muli %arg1, %c256_i32 : i32
    %18 = vector.broadcast %17 : i32 to vector<1x256xi32>
    %19 = arith.addi %18, %14 : vector<1x256xi32>
    %c256_i32_7 = arith.constant 256 : i32
    %20 = vector.broadcast %c256_i32_7 : i32 to vector<1x256xi32>
    %21 = arith.cmpi slt, %19, %20 : vector<1x256xi32>
    %22 = arith.andi %16, %21 : vector<1x256xi1>
    %23 = math.log %13 : vector<1x256xf32>
    %cst_8 = arith.constant 0.000000e+00 : f32
    %24 = vector.broadcast %cst_8 : f32 to vector<1x256xf32>
    %25 = arith.subf %24, %23 : vector<1x256xf32>
    %cst_9 = arith.constant 0.000000e+00 : f32
    %26 = vector.broadcast %cst_9 : f32 to vector<1x256xf32>
    %27 = arith.select %22, %25, %26 : vector<1x256xi1>, vector<1x256xf32>
    %c0_10 = arith.constant 0 : index
    %c0_11 = arith.constant 0 : index
    %28 = vector.load %arg6[%c0_10, %c0_11] : memref<1x256xf32, #tpu.memory_space<vmem>>, vector<1x256xf32>
    %29 = arith.addf %28, %27 : vector<1x256xf32>
    %c0_12 = arith.constant 0 : index
    %c0_13 = arith.constant 0 : index
    %30 = vector.load %arg6[%c0_12, %c0_13] : memref<1x256xf32, #tpu.memory_space<vmem>>, vector<1x256xf32>
    tpu.vector_store %arg6[%c0_12, %c0_13], %29 {strides = array<i32>} : memref<1x256xf32, #tpu.memory_space<vmem>>, vector<1x256xf32>,
    %c0_14 = arith.constant 0 : index
    %c0_15 = arith.constant 0 : index
    %31 = vector.load %arg7[%c0_14, %c0_15] : memref<1x256xf32, #tpu.memory_space<vmem>>, vector<1x256xf32>
    %cst_16 = arith.constant 0.000000e+00 : f32
    %32 = vector.broadcast %cst_16 : f32 to vector<1x256xf32>
    %33 = arith.cmpf one, %27, %32 : vector<1x256xf32>
    %34 = arith.extui %33 : vector<1x256xi1> to vector<1x256xi32>
    %35 = arith.sitofp %34 : vector<1x256xi32> to vector<1x256xf32>
    %36 = arith.addf %31, %35 : vector<1x256xf32>
    %c0_17 = arith.constant 0 : index
    %c0_18 = arith.constant 0 : index
    %37 = vector.load %arg7[%c0_17, %c0_18] : memref<1x256xf32, #tpu.memory_space<vmem>>, vector<1x256xf32>
    tpu.vector_store %arg7[%c0_17, %c0_18], %36 {strides = array<i32>} : memref<1x256xf32, #tpu.memory_space<vmem>>, vector<1x256xf32>,
    %c0_i32_19 = arith.constant 0 : i32
    %38 = arith.cmpi eq, %arg1, %c0_i32_19 : i32
    %39 = arith.extui %38 : i1 to i32
    %c0_i32_20 = arith.constant 0 : i32
    %40 = arith.cmpi ne, %39, %c0_i32_20 : i32
    scf.if %40 {
      %c0_21 = arith.constant 0 : index
      %c0_22 = arith.constant 0 : index
      %41 = vector.load %arg6[%c0_21, %c0_22] : memref<1x256xf32, #tpu.memory_space<vmem>>, vector<1x256xf32>
      %cst_23 = arith.constant dense<0.000000e+00> : vector<1xf32>
      %42 = vector.multi_reduction <add>, %41, %cst_23 [1] : vector<1x256xf32> to vector<1xf32>
      %43 = vector.shape_cast %42 : vector<1xf32> to vector<1x1xf32>
      %c0_24 = arith.constant 0 : index
      %c0_25 = arith.constant 0 : index
      %c0_26 = arith.constant 0 : index
      %44 = vector.load %arg4[%c0_24, %c0_25, %c0_26] : memref<1x1x1xf32, #tpu.memory_space<vmem>>, vector<1x1x1xf32>
      %45 = vector.shape_cast %44 : vector<1x1x1xf32> to vector<1x1xf32>
      %46 = vector.shape_cast %43 : vector<1x1xf32> to vector<1x1x1xf32>
      tpu.vector_store %arg4[%c0_24, %c0_25, %c0_26], %46 {strides = array<i32>} : memref<1x1x1xf32, #tpu.memory_space<vmem>>, vector<1x1x1xf32>,
      %c0_27 = arith.constant 0 : index
      %c0_28 = arith.constant 0 : index
      %47 = vector.load %arg7[%c0_27, %c0_28] : memref<1x256xf32, #tpu.memory_space<vmem>>, vector<1x256xf32>
      %cst_29 = arith.constant dense<0.000000e+00> : vector<1xf32>
      %48 = vector.multi_reduction <add>, %47, %cst_29 [1] : vector<1x256xf32> to vector<1xf32>
      %49 = vector.shape_cast %48 : vector<1xf32> to vector<1x1xf32>
      %c0_30 = arith.constant 0 : index
      %c0_31 = arith.constant 0 : index
      %c0_32 = arith.constant 0 : index
      %50 = vector.load %arg5[%c0_30, %c0_31, %c0_32] : memref<1x1x1xf32, #tpu.memory_space<vmem>>, vector<1x1x1xf32>
      %51 = vector.shape_cast %50 : vector<1x1x1xf32> to vector<1x1xf32>
      %52 = vector.shape_cast %49 : vector<1x1xf32> to vector<1x1x1xf32>
      tpu.vector_store %arg5[%c0_30, %c0_31, %c0_32], %52 {strides = array<i32>} : memref<1x1x1xf32, #tpu.memory_space<vmem>>, vector<1x1x1xf32>,
    } else {
    }
    return
  }
  func.func @transform_0(%arg0: i32, %arg1: i32) -> (i32, i32, i32) {
    %c0_i32 = arith.constant 0 : i32
    %c0_i32_0 = arith.constant 0 : i32
    return %arg0, %c0_i32, %arg1 : i32, i32, i32
  }
  func.func @transform_1(%arg0: i32, %arg1: i32) -> (i32, i32, i32) {
    %c0_i32 = arith.constant 0 : i32
    %c0_i32_0 = arith.constant 0 : i32
    return %arg0, %c0_i32, %arg1 : i32, i32, i32
  }
  func.func @transform_2(%arg0: i32, %arg1: i32) -> (i32, i32, i32) {
    %c0_i32 = arith.constant 0 : i32
    %c0_i32_0 = arith.constant 0 : i32
    %c0_i32_1 = arith.constant 0 : i32
    return %arg0, %c0_i32, %c0_i32_0 : i32, i32, i32
  }
  func.func @transform_3(%arg0: i32, %arg1: i32) -> (i32, i32, i32) {
    %c0_i32 = arith.constant 0 : i32
    %c0_i32_0 = arith.constant 0 : i32
    %c0_i32_1 = arith.constant 0 : i32
    return %arg0, %c0_i32, %c0_i32_0 : i32, i32, i32
  }
}

</mosaic_0001>

<bundles_post_ra>
// kernel: tpu_custom_call.1
= control target key start
LH: loop header
LB: loop body
LE: loop exit
PB: predicated region body
PF: predicated region fallthrough
CT: control target
= control target key end

     0   :  { %9 = vsyncpa [#allocation5], 0  ;;  %s945_s0 = inlined_call_operand.hbm [shape: f32[2,4,256], index: 0, kind: input, shape index: {}]   ;;  %s946_s1 = inlined_call_operand.hbm [shape: s32[2,1,256], index: 1, kind: input, shape index: {}]   ;;  %s947_s2 = inlined_call_operand.vmem [shape: f32[2,1,1], index: 2, kind: output, shape index: {0}]   ;;  %s948_s3 = inlined_call_operand.vmem [shape: f32[2,1,1], index: 3, kind: output, shape index: {1}]  }
   0x1   :  { %11 = vsyncpa [#allocation5 + $0x1], 0 }
   0x2   :  { %12 = vsyncpa [#allocation7], 0 }
   0x3   :  { %14 = vsyncpa [#allocation7 + $0x1], 0  ;;  %s754_s12 = smov 0   ;;  %s756_s13 = smov 0  }
   0x4   :  { %s758_s14 = smov 0   ;;  %s760_s15 = smov 0  }
   0x5   :  { %s762_s16 = smov 0   ;;  %s764_s17 = smov 0  }
   0x6 LB: > { %s527_s18 = sadd.s32 4294967295, %s727_s17   ;;  %s32_s19 = sadd.s32 1, %s723_s16  ;;  %s727_s17 = sphi %s764_s17, %s20_s17   ;;  %s723_s16 = sphi %s762_s16, %s964_s16   ;;  %s719_s15 = sphi %s760_s15, %s963_s15   ;;  %s715_s14 = sphi %s758_s14, %s962_s14   ;;  %s711_s13 = sphi %s756_s13, %s961_s13   ;;  %s707_s12 = sphi %s754_s12, %s960_s12  }
   0x7   : > { %p34_p0 = scmp.ge.s32.totalorder %s32_s19, 2  ;;  %s41_s20 = sadd.s32 1, %s715_s14 }
   0x8   : > { %p48_p1 = scmp.ne.s32.totalorder %s715_s14, %s711_s13  ;;  %p49_p2 = scmp.eq.s32.totalorder %s727_s17, 0 }
   0x9   : > { %s966_s19 = smov (%p34_p0, %s32_s19), 0  ;;  %p54_p4 = scmp.ne.s32.totalorder %s711_s13, %s707_s12 }
   0xa   : > { %p790_p3 = por %p49_p2, %p48_p1  ;;  %s36_s22 = ssub.s32 %s723_s16, %s966_s19 }
   0xb   : > { %p55_p5 = scmp.eq.s32.totalorder %s527_s18, 0  ;;  %p39_p6 = scmp.eq.s32.totalorder %s36_s22, 0 }
   0xc   : > { %p556_p8 = scmp.lt.s32.totalorder %s727_s17, 2  ;;  %s806_s25 = sand.u32 1, %s715_s14  }
   0xd   : > { %p797_p7 = por %p55_p5, %p54_p4  ;;  %s543_s26 = sshll.u32 %s723_s16, 7 }
   0xe   : > { %s803_s24 = scalar_select %p39_p6, %s715_s14, %s41_s20  }
   0xf   : > { %s951_s23 = scalar_select %p797_p7, 1, 0 }
  0x10   : > { %s531_s27 = sshll.u32 %s806_s25, 3  ;;  %s813_s30 = scalar_lea.hbm %s945_s0, %s543_s26 }
  0x11   : > { %s162_s4 = scalar_lea.vmem [#allocation4], %s531_s27  ;;  %p817_p9 = pnand %p556_p8, %p790_p3 }
  0x12   : > { %s172_s5 = sshll.u32 %s162_s4, 4  ;;  %s159_s7 = scalar_lea.sflag [#allocation5], %s806_s25  ;;  %s821_s5 = int_to_ptr.vmem [resolvable:$true] %s172_s5 }
  0x13   : > { %s613_s8 = scalar_lea.hbm %s813_s30, 128  ;;  %p615_p13 = pneg %p817_p9 }
  0x14   : > { %p614_p12 = scmp.ne.s32.totalorder %s813_s30, %s613_s8  ;;  %s618_s11 = scalar_lea.hbm %s945_s0, 256 }
  0x15   : > { %p619_p2 = scmp.lt.u32.totalorder %s813_s30, %s945_s0  ;;  %p620_p3 = scmp.lt.u32.totalorder %s618_s11, %s613_s8 }
  0x16   : > { %p616_p0 = pnand %p615_p13, %p614_p12  ;;  %p622_p5 = scmp.lt.u32.totalorder %s613_s8, %s813_s30 }
  0x17   : > { %p621_p4 = por %p620_p3, %p619_p2 }
  0x18   : > { %p617_p1 = pneg %p616_p0 }
  0x19   : > { %p623_p6 = por %p622_p5, %p621_p4 }
  0x1b   : > { %p624_p8 = pnand %p623_p6, %p617_p1 }
  0x1d   : > { %627 = shalt.err (!%p624_p8)
}
  0x1e   : > { %s628_s20 = scalar_lea.vmem %s821_s5, 128  ;;  %s729_s21 = smov [#allocation4]  }
  0x1f   : > { %p629_p12 = scmp.ne.s32.totalorder %s821_s5, %s628_s20  ;;  %s633_s22 = sshll.u32 %s729_s21, 4  ;;  %s634_s22 = int_to_ptr.vmem [resolvable:$false] %s633_s22 }
  0x20   : > { %s635_s26 = scalar_lea.vmem %s634_s22, 256  ;;  %p636_p11 = scmp.lt.s32.totalorder %s821_s5, %s634_s22 }
  0x21   : > { %p631_p0 = pnand %p629_p12, %p615_p13  ;;  %p637_p2 = scmp.lt.s32.totalorder %s635_s26, %s628_s20 }
  0x23   : > { %p632_p10 = pneg %p631_p0  ;;  %p638_p3 = por %p637_p2, %p636_p11 }
  0x25   : > { %p639_p4 = pnand %p638_p3, %p632_p10 }
  0x27   : > { %642 = shalt.err (!%p639_p4)
}
  0x28   : > { %552 = dma.hbm_to_vmem [thread:$0]  (!%p817_p9), %s813_s30, 128, %s821_s5, %s159_s7  }
  0x29   : > { %p953_p1 = scmp.lt.s32.totalorder %s727_s17, 3  ;;  %p954_p5 = scmp.ge.s32.totalorder %s727_s17, 1 }
  0x2a   : > { %s534_s28 = sshll.u32 %s806_s25, 1  ;;  %s544_s29 = sshll.u32 %s723_s16, 5 }
  0x2b   : > { %p855_p6 = pnand %p954_p5, %p953_p1  ;;  %s864_s9 = scalar_lea.hbm %s946_s1, %s544_s29 }
  0x2c   : > { %s183_s10 = scalar_lea.vmem [#allocation6], %s534_s28  ;;  %s180_s30 = scalar_lea.sflag [#allocation7], %s806_s25 }
  0x2d   : > { %s955_s27 = scalar_select %p855_p6, 1, 0 }
  0x2e   : > { %s193_s11 = sshll.u32 %s183_s10, 4  ;;  %s643_s5 = scalar_lea.hbm %s864_s9, 32  ;;  %s194_s11 = int_to_ptr.vmem [resolvable:$true] %s193_s11 }
  0x2f   : > { %p644_p10 = scmp.ne.s32.totalorder %s864_s9, %s643_s5  ;;  %s648_s18 = scalar_lea.hbm %s946_s1, 64 }
  0x30   : > { %p649_p12 = scmp.lt.u32.totalorder %s864_s9, %s946_s1  ;;  %p650_p0 = scmp.lt.u32.totalorder %s648_s18, %s643_s5 }
  0x31   : > { %p646_p11 = pnand %p644_p10, %p615_p13  ;;  %p652_p3 = scmp.lt.u32.totalorder %s643_s5, %s864_s9 }
  0x32   : > { %p651_p2 = por %p650_p0, %p649_p12 }
  0x33   : > { %p647_p8 = pneg %p646_p11 }
  0x34   : > { %p653_p4 = por %p652_p3, %p651_p2 }
  0x36   : > { %p654_p1 = pnand %p653_p4, %p647_p8 }
  0x38   : > { %657 = shalt.err (!%p654_p1)
}
  0x39   : > { %s658_s25 = scalar_lea.vmem %s194_s11, 32  ;;  %s730_s22 = smov [#allocation6]  }
  0x3a   : > { %p659_p5 = scmp.ne.s32.totalorder %s194_s11, %s658_s25  ;;  %s663_s26 = sshll.u32 %s730_s22, 4  ;;  %s664_s26 = int_to_ptr.vmem [resolvable:$false] %s663_s26 }
  0x3b   : > { %s665_s28 = scalar_lea.vmem %s664_s26, 64  ;;  %p666_p7 = scmp.lt.s32.totalorder %s194_s11, %s664_s26 }
  0x3c   : > { %p661_p10 = pnand %p659_p5, %p615_p13  ;;  %p667_p6 = scmp.lt.s32.totalorder %s665_s28, %s658_s25 }
  0x3e   : > { %p662_p11 = pneg %p661_p10  ;;  %p668_p0 = por %p667_p6, %p666_p7 }
  0x40   : > { %p669_p12 = pnand %p668_p0, %p662_p11 }
  0x42   : > { %672 = shalt.err (!%p669_p12)
}
  0x43   : > { %555 = dma.hbm_to_vmem [thread:$0]  (!%p817_p9), %s864_s9, 32, %s194_s11, %s180_s30  }
  0x44   : > { %p956_p8 = scmp.ne.s32.totalorder %s955_s27, 0 }
  0x45   : > { %s204_s29 = sand.u32 (!%p956_p8), 1, %s711_s13   ;;  %p957_p13 = scmp.ne.s32.totalorder (!%p956_p8), %s951_s23, 0 }
  0x46   : > { %202 = sbr.rel (%p956_p8) target bundleno = 289 (0x121), region = 28  ;;  %s538_s4 = sshll.u32 (!%p956_p8), %s204_s29, 3 }
  0x47   : > { %s205_s8 = scalar_lea.sflag (!%p956_p8), [#allocation5], %s204_s29  ;;  %s208_s10 = scalar_lea.vmem (!%p956_p8), [#allocation4], %s538_s4 }
  0x4d   : > { %698 = dma.done.wait (%p957_p13), %s205_s8, 128  }
  0x4e   : > { %700 = vsyncadd (%p957_p13), %s205_s8, 4294967168  ;;  %s539_s5 = sshll.u32 %s204_s29, 1  ;;  %s214_s7 = scalar_lea.sflag [#allocation7], %s204_s29 }
  0x4f   : > { %s217_s6 = scalar_lea.vmem [#allocation6], %s539_s5 }
  0x50   : > { %702 = dma.done.wait (%p957_p13), %s214_s7, 32  }
  0x51   : > { %704 = vsyncadd (%p957_p13), %s214_s7, 4294967264  ;;  %v258_v0 = vlaneseq  ;;  %v731_v3 = vmov 0.0   ;;  %v264_v6 = vld [vmem:[%s208_s10] sm:$0xff]  ;;  %v265_v7 = vld [vmem:[%s217_s6] sm:$0x3]  ;;  %vm283_vm1 = vcmask 1043456  }
  0x52   : > { %v279_v10 = vcombine.high %v264_v6, %v264_v6  ;;  %v732_v25 = vmov 1966171168   ;;  %v733_v30 = vmov 1   ;;  %vm301_vm4 = vcmp.ne.s32.totalorder %v265_v7, 255  ;;  %p248_p7 = scmp.lt.s32.totalorder %s719_s15, 1 }
  0x53   : > { %vm897_vm0 = vcmp.lt.s32.totalorder %v258_v0, 256  ;;  %v267_v2 = vshrl.u32 %v258_v0, 7  ;;  %v312_v26 = vunpack.c.l.s4 %v732_v25  ;;  %v310_v31 = vcombine.low %v733_v30, %v733_v30 }
  0x54   : > { %262 = vst.msk [vmem:[#allocation2] sm:$0x3] %vm897_vm0, %v731_v3  ;;  %263 = vst.msk [vmem:[#allocation3] sm:$0x3] %vm897_vm0, %v731_v3  ;;  %vm380_vm8 = vcmask 1040384   ;;  %s968_s15 = smov (!%p248_p7, %s719_s15), 1 }
  0x55   : > { %v905_v4 = vsub.s32 0, %v267_v2  ;;  %v907_v5 = vsub.s32 1, %v267_v2  ;;  %v313_v29 = vunpack.c.0.s8 %v312_v26  ;;  %s250_s9 = scalar_lea.vmem %s947_s2, %s968_s15  ;;  %vm386_vm9 = vcmask 0   ;;  %s253_s12 = scalar_lea.vmem %s948_s3, %s968_s15 }
  0x57   : > { %v271_v8 = vrot.slane %v265_v7, %v905_v4  ;;  %v275_v9 = vrot.slane %v265_v7, %v907_v5  ;;  %v316_v32 = vsub.s32 %v313_v29, %v267_v2 }
  0x59   : > { %vm276_vm2 = vcmp.eq.s32.totalorder %v267_v2, %v271_v8  ;;  %vm277_vm3 = vcmp.eq.s32.totalorder %v267_v2, %v275_v9  ;;  %v317_v33 = vrot.slane %v310_v31, %v316_v32 }
  0x5a   : > { %v281_v11 = vsel %vm276_vm2, %v264_v6, 0.0  ;;  %v282_v12 = vsel %vm277_vm3, %v279_v10, 0.0 }
  0x5b   : > { %v284_v13 = vsel %vm283_vm1, %v281_v11, 0.0  ;;  %v291_v14 = vsel %vm283_vm1, %v282_v12, 0.0  ;;  %v324_v37 = vrot.slane %v317_v33, %v316_v32  ;;  %v352_v44 = vld [vmem:[#allocation2] sm:$0x3]  ;;  %v359_v46 = vld [vmem:[#allocation3] sm:$0x3] }
  0x5c   : > { %v285_v15 = vrot.slane %v284_v13, 4  ;;  %v292_v16 = vrot.slane %v291_v14, 4 }
  0x5d   : > { %vm325_vm5 = vcmp.ne.s32.totalorder %v324_v37, 0 }
  0x5e   : > { %v286_v17 = vadd.f32 %v285_v15, %v284_v13  ;;  %v293_v18 = vadd.f32 %v292_v16, %v291_v14  ;;  %vm326_vm6 = vmand %vm301_vm4, %vm325_vm5 }
  0x60   : > { %v287_v19 = vrot.slane %v286_v17, 2  ;;  %v294_v20 = vrot.slane %v293_v18, 2 }
  0x62   : > { %v288_v21 = vadd.f32 %v287_v19, %v286_v17  ;;  %v295_v22 = vadd.f32 %v294_v20, %v293_v18 }
  0x64   : > { %v289_v23 = vrot.slane %v288_v21, 1  ;;  %v296_v24 = vrot.slane %v295_v22, 1 }
  0x66   : > { %v290_v27 = vadd.f32 %v289_v23, %v288_v21  ;;  %v297_v28 = vadd.f32 %v296_v24, %v295_v22 }
  0x68   : > { %609 = vlog2.f32 %v290_v27 }
  0x69   : > { %611 = vlog2.f32 %v297_v28 }
  0x72   : > { %v610_v34 = vpop.eup %609 }
  0x73   : > { %v612_v35 = vpop.eup %611  ;;  %v328_v36 = vmul.f32 0.6931472, %v610_v34 }
  0x74   : > { %v330_v38 = vmul.f32 0.6931472, %v612_v35 }
  0x75   : > { %v331_v39 = vsub.f32 0.0, %v328_v36 }
  0x76   : > { %v332_v40 = vsub.f32 0.0, %v330_v38 }
  0x78   : > { %v335_v41 = vcombine.low %v331_v39, %v332_v40 }
  0x7a   : > { %v342_v42 = vrot.slane %v335_v41, %v316_v32 }
  0x7c   : > { %v349_v43 = vrot.slane %v342_v42, %v316_v32 }
  0x7e   : > { %v351_v45 = vsel %vm326_vm6, %v349_v43, 0.0 }
  0x7f   : > { %v353_v47 = vadd.f32 %v352_v44, %v351_v45  ;;  %vm360_vm7 = vcmp.ne.f32.partialorder %v351_v45, 0.0 }
  0x80   : > { %v540_v48 = vsel %vm360_vm7, 1.0, %v731_v3 }
  0x81   : > { %358 = vst.msk [vmem:[#allocation2] sm:$0x3] %vm897_vm0, %v353_v47  ;;  %v363_v49 = vadd.f32 %v540_v48, %v359_v46 }
  0x83   : > { %364 = vst.msk [vmem:[#allocation3] sm:$0x3] %vm897_vm0, %v363_v49 }
  0x88   : > { %v368_v50 = vld [vmem:[#allocation2] sm:$0x3] }
  0x89   : > { %v373_v51 = vrot.slane %v368_v50, %v905_v4  ;;  %v377_v52 = vrot.slane %v368_v50, %v907_v5 }
  0x8a   : > { %v388_v53 = vld [vmem:[#allocation3] sm:$0x3] }
  0x8b   : > { %v381_v54 = vsel %vm380_vm8, %v373_v51, 0.0  ;;  %v382_v55 = vsel %vm380_vm8, %v377_v52, 0.0  ;;  %v393_v56 = vrot.slane %v388_v53, %v905_v4  ;;  %v397_v57 = vrot.slane %v388_v53, %v907_v5 }
  0x8c   : > { %v383_v58 = vadd.f32 %v382_v55, %v381_v54 }
  0x8d   : > { %v400_v59 = vsel %vm380_vm8, %v393_v56, 0.0  ;;  %v401_v60 = vsel %vm380_vm8, %v397_v57, 0.0 }
  0x8e   : > { %384 = vadd.xlane.f32.xlu0 %v383_v58  ;;  %v402_v61 = vadd.f32 %v401_v60, %v400_v59 }
  0x92   : > { %403 = vadd.xlane.f32.xlu0 %v402_v61 }
 0x11b   : > { %v385_v62 = vpop.xlane.xlu0 %384 }
 0x11c   : > { %387 = vst.msk [vmem:[%s250_s9] sm:$0x1] %vm386_vm9, %v385_v62 }
 0x11f   : > { %v404_v63 = vpop.xlane.xlu0 %403 }
 0x120   : > { %405 = vst.msk [vmem:[%s253_s12] sm:$0x1] %vm386_vm9, %v404_v63 }
 0x121 PF: > { %s20_s17 = sadd.s32 1, %s727_s17   ;;  %s960_s12 = smov %s711_s13 }
 0x122   : > { %p17_p9 = scmp.ge.s32.totalorder %s20_s17, 4   ;;  %s961_s13 = smov %s715_s14 }
 0x123   : > { %s962_s14 = smov %s803_s24  ;;  %s963_s15 = smov %s723_s16 }
 0x124   : > { %s964_s16 = smov %s966_s19  ;;  %19 = sbr.rel (!%p17_p9) target bundleno = 6 (0x6), region = 101 }
 0x12b   :  { %435 = vsyncpa [#allocation5], 1 }
 0x12c   :  { %437 = vsyncpa [#allocation5 + $0x1], 1 }
 0x12d   :  { %438 = vsyncpa [#allocation7], 1 }
 0x12e   :  { %440 = vsyncpa [#allocation7 + $0x1], 1 }

</bundles_post_ra>
